<compile_context>
chip_gen: v7x
topology: tpu7x:2x2x1
jax: 0.10.0
libtpu: 0.0.40
codegen_flags: <defaults>
</compile_context>

<pallas_src>
import functools

import jax
import jax.numpy as jnp
from jax import lax
from jax.experimental import pallas as pl
from jax.experimental.pallas import tpu as pltpu


def _round_up(x, m):
    return (x + m - 1) // m * m


def fire_kernel(x_ref, wsq_ref, bsq_ref, wf_ref, bf_ref, mask_ref,
                out_ref, taps_ref, *, csq_p, shifts):
    """One batch-block, channel-major (lane axis = padded H*W).

    x_ref:    (B_blk, Cin, HWp)   input activations (original dtype)
    wsq_ref:  (Csq_p, Cin)        squeeze 1x1 weight (compute dtype)
    bsq_ref:  (Csq_p, 1)          squeeze bias (f32)
    wf_ref:   (Cout, 9*Csq_p)     fused expand1x1 + expand3x3 weight
    bf_ref:   (Cout, 1)           fused expand bias (f32)
    mask_ref: (9, HWp)            0/1 border + pad-lane masks per 3x3 tap (f32)
    out_ref:  (B_blk, Cout, HWp)
    taps_ref: (9*Csq_p, HWp)      VMEM scratch (compute dtype) for im2col taps
    """
    b_blk = x_ref.shape[0]
    cdtype = taps_ref.dtype

    def body(b, carry):
        # Squeeze 1x1: (Csq_p, Cin) @ (Cin, HWp), f32 accumulation.
        x = x_ref[b].astype(cdtype)
        sq = jnp.dot(wsq_ref[...], x, preferred_element_type=jnp.float32)
        sq = jnp.maximum(sq + bsq_ref[...], 0.0)             # (Csq_p, HWp) f32

        # im2col for the 3x3 conv (padding=1): each tap is a static lane roll
        # of sq plus a precomputed border/pad mask, stored straight into its
        # sublane-aligned slice of the VMEM scratch (no big concatenated
        # value kept live in vregs).
        for t, shift in enumerate(shifts):
            if shift == 0:
                tap = sq                                      # center tap
            else:
                tap = pltpu.roll(sq, shift=shift, axis=1) * mask_ref[t:t + 1, :]
            taps_ref[t * csq_p:(t + 1) * csq_p, :] = tap.astype(cdtype)

        # Fused expand: a single (Cout, 9*Csq_p) @ (9*Csq_p, HWp) matmul covers
        # both expand1x1 (center-tap columns) and expand3x3; one bias add, one
        # ReLU, one lane-dense full-block store.
        y = jnp.dot(wf_ref[...], taps_ref[...],
                    preferred_element_type=jnp.float32)
        y = jnp.maximum(y + bf_ref[...], 0.0)                 # (Cout, HWp) f32
        out_ref[b] = y.astype(out_ref.dtype)
        return carry

    lax.fori_loop(0, b_blk, body, None, unroll=True)


def fire_module(x_nchw, wsq, bsq, we1, be1, we3, be3, *,
                compute_dtype=jnp.bfloat16, batch_block=4):
    """FireModule forward, NCHW in / NCHW out (matches the torch module).

    Synthetic, kernel-friendly parameter layouts (a real PyTorch port would
    transpose the OIHW Conv2d weights into these in this wrapper):
      wsq: (Cin, Csq)          bsq: (Csq,)
      we1: (Csq, Ce1)          be1: (Ce1,)
      we3: (3, 3, Csq, Ce3)    be3: (Ce3,)
    """
    N, Cin, H, W = x_nchw.shape
    Csq = wsq.shape[1]
    Ce1 = we1.shape[1]
    Ce3 = we3.shape[3]
    Cout = Ce1 + Ce3
    HW = H * W

    cdtype = jnp.dtype(compute_dtype)
    sublane = 8 * (4 // cdtype.itemsize)          # 8 for f32, 16 for bf16
    Csq_p = _round_up(Csq, sublane)               # sublane-aligned tap blocks
    HWp = _round_up(HW, 128)                      # lane-dense stores

    # Batch blocking: amortize per-grid-step overhead, but keep >= 2 grid
    # steps when N allows so both v7x TensorCores get work.
    B_blk = max(1, min(batch_block, (N + 1) // 2))
    N_pad = _round_up(N, B_blk)
    grid = (N_pad // B_blk,)

    # ---------- one-time weight / mask massaging (tiny tensors) ----------
    wsq_k = jnp.zeros((Csq_p, Cin), cdtype).at[:Csq, :].set(
        jnp.transpose(wsq).astype(cdtype))                   # (Csq_p, Cin)
    bsq_k = jnp.zeros((Csq_p, 1), jnp.float32).at[:Csq, 0].set(
        bsq.astype(jnp.float32))

    # Fused expand weight (Cout, 9*Csq_p): rows [0:Ce1] carry expand1x1 in the
    # center-tap (dy=1, dx=1) column block; rows [Ce1:] carry expand3x3 with
    # columns ordered (dy, dx, c) to match the tap staging in the kernel.
    w1 = jnp.zeros((Ce1, 9, Csq_p), jnp.float32)
    w1 = w1.at[:, 4, :Csq].set(jnp.transpose(we1).astype(jnp.float32))
    w3 = jnp.zeros((Ce3, 3, 3, Csq_p), jnp.float32)
    w3 = w3.at[:, :, :, :Csq].set(
        jnp.transpose(we3, (3, 0, 1, 2)).astype(jnp.float32))
    wf_k = jnp.concatenate(
        [w1.reshape(Ce1, 9 * Csq_p), w3.reshape(Ce3, 9 * Csq_p)],
        axis=0).astype(cdtype)                               # (Cout, 9*Csq_p)
    bf_k = jnp.concatenate([be1, be3]).reshape(Cout, 1).astype(jnp.float32)

    # Per-tap border + pad-lane masks and static lane-roll shifts (batch
    # independent -> computed once here, never re-derived in the kernel).
    pos = jnp.arange(HWp)
    hh, ww = pos // W, pos % W
    masks, shifts = [], []
    for dy in range(3):
        for dx in range(3):
            oy, ox = dy - 1, dx - 1
            valid = ((hh + oy >= 0) & (hh + oy < H) &
                     (ww + ox >= 0) & (ww + ox < W) & (pos < HW))
            masks.append(valid)
            shifts.append((-(oy * W + ox)) % HWp)
    mask_k = jnp.stack(masks).astype(jnp.float32)            # (9, HWp)

    # ---------- activations: free NCHW reshape + zero pad ----------
    x = x_nchw.reshape(N, Cin, HW)
    x = jnp.pad(x, ((0, N_pad - N), (0, 0), (0, HWp - HW)))

    kernel = functools.partial(fire_kernel, csq_p=Csq_p, shifts=tuple(shifts))

    # Explicit scoped-VMEM budget (default is only 16/32 MiB); clamp to a
    # value that is safe on v7x (64 MiB physical per TensorCore).
    itemsize = jnp.dtype(x_nchw.dtype).itemsize
    blk_bytes = (B_blk * Cin * HWp + B_blk * Cout * HWp) * itemsize
    w_bytes = ((wsq_k.size + wf_k.size) * cdtype.itemsize
               + (bsq_k.size + bf_k.size + mask_k.size) * 4)
    taps_bytes = 9 * Csq_p * HWp * cdtype.itemsize
    vmem_need = 2 * (blk_bytes + w_bytes) + taps_bytes       # double-buffered
    vmem_limit = int(min(max(2 * vmem_need, 32 << 20), 48 << 20))

    out = pl.pallas_call(
        kernel,
        out_shape=jax.ShapeDtypeStruct((N_pad, Cout, HWp), x_nchw.dtype),
        grid_spec=pltpu.PrefetchScalarGridSpec(
            num_scalar_prefetch=0,
            grid=grid,
            in_specs=[
                pl.BlockSpec((B_blk, Cin, HWp), lambda n: (n, 0, 0)),
                pl.BlockSpec((Csq_p, Cin), lambda n: (0, 0)),
                pl.BlockSpec((Csq_p, 1), lambda n: (0, 0)),
                pl.BlockSpec((Cout, 9 * Csq_p), lambda n: (0, 0)),
                pl.BlockSpec((Cout, 1), lambda n: (0, 0)),
                pl.BlockSpec((9, HWp), lambda n: (0, 0)),
            ],
            out_specs=pl.BlockSpec((B_blk, Cout, HWp), lambda n: (n, 0, 0)),
            scratch_shapes=[pltpu.VMEM((9 * Csq_p, HWp), cdtype)],
        ),
        compiler_params=pltpu.CompilerParams(
            dimension_semantics=("parallel",),
            vmem_limit_bytes=vmem_limit),
    )(x, wsq_k, bsq_k, wf_k, bf_k, mask_k)

    # TODO(synk): optionally emit bf16 output / fuse the following maxpool to
    # halve HBM traffic when the surrounding graph tolerates it.
    return out[:N, :, :HW].reshape(N, Cout, H, W)


def ref_fire(x, wsq, bsq, we1, be1, we3, be3):
    """Pure-JAX f32 reference matching torch Conv2d semantics (NCHW)."""
    dn = ("NCHW", "OIHW", "NCHW")
    sq = jax.lax.conv_general_dilated(
        x, jnp.transpose(wsq)[..., None, None], (1, 1), "VALID",
        dimension_numbers=dn)
    sq = jax.nn.relu(sq + bsq.reshape(1, -1, 1, 1))
    e1 = jax.lax.conv_general_dilated(
        sq, jnp.transpose(we1)[..., None, None], (1, 1), "VALID",
        dimension_numbers=dn)
    e1 = jax.nn.relu(e1 + be1.reshape(1, -1, 1, 1))
    w3_oihw = jnp.transpose(we3, (3, 2, 0, 1))
    e3 = jax.lax.conv_general_dilated(
        sq, w3_oihw, (1, 1), ((1, 1), (1, 1)), dimension_numbers=dn)
    e3 = jax.nn.relu(e3 + be3.reshape(1, -1, 1, 1))
    return jnp.concatenate([e1, e3], axis=1)


if __name__ == "__main__":
    # Small FireModule config: in=4, squeeze=8, expand1x1=16, expand3x3=16.
    N, Cin, H, W = 2, 4, 16, 16
    Csq, Ce1, Ce3 = 8, 16, 16

    key = jax.random.PRNGKey(0)
    k = jax.random.split(key, 8)
    x = jax.random.normal(k[0], (N, Cin, H, W), jnp.float32)

    wsq = 0.2 * jax.random.normal(k[1], (Cin, Csq), jnp.float32)
    bsq = 0.1 * jax.random.normal(k[2], (Csq,), jnp.float32)
    we1 = 0.2 * jax.random.normal(k[3], (Csq, Ce1), jnp.float32)
    be1 = 0.1 * jax.random.normal(k[4], (Ce1,), jnp.float32)
    we3 = 0.2 * jax.random.normal(k[5], (3, 3, Csq, Ce3), jnp.float32)
    be3 = 0.1 * jax.random.normal(k[6], (Ce3,), jnp.float32)

    ref = ref_fire(x, wsq, bsq, we1, be1, we3, be3)

    # f32 matmul operands: parity check with the f32 torch module semantics.
    out_f32 = jax.block_until_ready(
        fire_module(x, wsq, bsq, we1, be1, we3, be3,
                    compute_dtype=jnp.float32))
    assert out_f32.shape == (N, Ce1 + Ce3, H, W), out_f32.shape
    assert jnp.allclose(out_f32, ref, atol=1e-3, rtol=1e-3), (
        float(jnp.max(jnp.abs(out_f32 - ref))))

    # bf16 matmul operands (default perf path): f32 accumulation + epilogue.
    out_bf16 = jax.block_until_ready(
        fire_module(x, wsq, bsq, we1, be1, we3, be3))
    assert out_bf16.shape == (N, Ce1 + Ce3, H, W), out_bf16.shape
    assert jnp.allclose(out_bf16, ref, atol=5e-2, rtol=5e-2), (
        float(jnp.max(jnp.abs(out_bf16 - ref))))

    print("KERNEL_OK")
</pallas_src>

<mosaic_0001>
module attributes {stable_mosaic.version = 11 : i64} {
  func.func @fire_kernel(%arg0: i32, %arg1: memref<1x4x256xf32, #tpu.memory_space<vmem>>, %arg2: memref<8x4xf32, #tpu.memory_space<vmem>>, %arg3: memref<8x1xf32, #tpu.memory_space<vmem>>, %arg4: memref<32x72xf32, #tpu.memory_space<vmem>>, %arg5: memref<32x1xf32, #tpu.memory_space<vmem>>, %arg6: memref<9x256xf32, #tpu.memory_space<vmem>>, %arg7: memref<1x32x256xf32, #tpu.memory_space<vmem>>, %arg8: memref<72x256xf32, #tpu.memory_space<vmem>>) attributes {dimension_semantics = [#tpu.dimension_semantics<parallel>], iteration_bounds = array<i64: 2>, scalar_prefetch = 0 : i64, scratch_operands = 1 : i64, tpu.core_type = #tpu.core_type<tc>, window_params = [{transform_indices = @transform_0, window_bounds = array<i64: 1, 4, 256>}, {pipeline_mode = #tpu.pipeline_mode<synchronous>, transform_indices = @transform_1, window_bounds = array<i64: 8, 4>}, {pipeline_mode = #tpu.pipeline_mode<synchronous>, transform_indices = @transform_2, window_bounds = array<i64: 8, 1>}, {pipeline_mode = #tpu.pipeline_mode<synchronous>, transform_indices = @transform_3, window_bounds = array<i64: 32, 72>}, {pipeline_mode = #tpu.pipeline_mode<synchronous>, transform_indices = @transform_4, window_bounds = array<i64: 32, 1>}, {pipeline_mode = #tpu.pipeline_mode<synchronous>, transform_indices = @transform_5, window_bounds = array<i64: 9, 256>}, {transform_indices = @transform_6, window_bounds = array<i64: 1, 32, 256>}]} {
    %c0_i32 = arith.constant 0 : i32
    %0 = arith.index_cast %c0_i32 : i32 to index
    %c0 = arith.constant 0 : index
    %c0_0 = arith.constant 0 : index
    %1 = vector.load %arg1[%0, %c0, %c0_0] : memref<1x4x256xf32, #tpu.memory_space<vmem>>, vector<1x4x256xf32>
    %2 = vector.shape_cast %1 : vector<1x4x256xf32> to vector<4x256xf32>
    %c0_1 = arith.constant 0 : index
    %c0_2 = arith.constant 0 : index
    %3 = vector.load %arg2[%c0_1, %c0_2] : memref<8x4xf32, #tpu.memory_space<vmem>>, vector<8x4xf32>
    %cst = arith.constant dense<0.000000e+00> : vector<8x256xf32>
    %4 = tpu.matmul %3, %2, %cst {dimension_numbers = #tpu.dot_dimension_numbers<[1], [0], [0], [1], [0, 0, 1, 1], [], []>} : vector<8x4xf32>, vector<4x256xf32>, vector<8x256xf32> -> vector<8x256xf32>
    %c0_3 = arith.constant 0 : index
    %c0_4 = arith.constant 0 : index
    %5 = vector.load %arg3[%c0_3, %c0_4] : memref<8x1xf32, #tpu.memory_space<vmem>>, vector<8x1xf32>
    %6 = vector.broadcast %5 : vector<8x1xf32> to vector<8x256xf32>
    %7 = arith.addf %4, %6 : vector<8x256xf32>
    %cst_5 = arith.constant 0.000000e+00 : f32
    %8 = vector.broadcast %cst_5 : f32 to vector<8x256xf32>
    %9 = arith.maximumf %7, %8 : vector<8x256xf32>
    %c17_i32 = arith.constant 17 : i32
    %10 = tpu.dynamic_rotate %9 by %c17_i32 dim 1 : vector<8x256xf32>, i32 -> vector<8x256xf32>
    %c0_6 = arith.constant 0 : index
    %c0_7 = arith.constant 0 : index
    %11 = vector.load %arg6[%c0_6, %c0_7] : memref<9x256xf32, #tpu.memory_space<vmem>>, vector<1x256xf32>
    %12 = vector.broadcast %11 : vector<1x256xf32> to vector<8x256xf32>
    %13 = arith.mulf %10, %12 : vector<8x256xf32>
    %c0_8 = arith.constant 0 : index
    %c0_9 = arith.constant 0 : index
    %14 = vector.load %arg8[%c0_8, %c0_9] : memref<72x256xf32, #tpu.memory_space<vmem>>, vector<8x256xf32>
    tpu.vector_store %arg8[%c0_8, %c0_9], %13 {strides = array<i32>} : memref<72x256xf32, #tpu.memory_space<vmem>>, vector<8x256xf32>,
    %c16_i32 = arith.constant 16 : i32
    %15 = tpu.dynamic_rotate %9 by %c16_i32 dim 1 : vector<8x256xf32>, i32 -> vector<8x256xf32>
    %c1 = arith.constant 1 : index
    %c0_10 = arith.constant 0 : index
    %16 = vector.load %arg6[%c1, %c0_10] : memref<9x256xf32, #tpu.memory_space<vmem>>, vector<1x256xf32>
    %17 = vector.broadcast %16 : vector<1x256xf32> to vector<8x256xf32>
    %18 = arith.mulf %15, %17 : vector<8x256xf32>
    %c8 = arith.constant 8 : index
    %c0_11 = arith.constant 0 : index
    %19 = vector.load %arg8[%c8, %c0_11] : memref<72x256xf32, #tpu.memory_space<vmem>>, vector<8x256xf32>
    tpu.vector_store %arg8[%c8, %c0_11], %18 {strides = array<i32>} : memref<72x256xf32, #tpu.memory_space<vmem>>, vector<8x256xf32>,
    %c15_i32 = arith.constant 15 : i32
    %20 = tpu.dynamic_rotate %9 by %c15_i32 dim 1 : vector<8x256xf32>, i32 -> vector<8x256xf32>
    %c2 = arith.constant 2 : index
    %c0_12 = arith.constant 0 : index
    %21 = vector.load %arg6[%c2, %c0_12] : memref<9x256xf32, #tpu.memory_space<vmem>>, vector<1x256xf32>
    %22 = vector.broadcast %21 : vector<1x256xf32> to vector<8x256xf32>
    %23 = arith.mulf %20, %22 : vector<8x256xf32>
    %c16 = arith.constant 16 : index
    %c0_13 = arith.constant 0 : index
    %24 = vector.load %arg8[%c16, %c0_13] : memref<72x256xf32, #tpu.memory_space<vmem>>, vector<8x256xf32>
    tpu.vector_store %arg8[%c16, %c0_13], %23 {strides = array<i32>} : memref<72x256xf32, #tpu.memory_space<vmem>>, vector<8x256xf32>,
    %c1_i32 = arith.constant 1 : i32
    %25 = tpu.dynamic_rotate %9 by %c1_i32 dim 1 : vector<8x256xf32>, i32 -> vector<8x256xf32>
    %c3 = arith.constant 3 : index
    %c0_14 = arith.constant 0 : index
    %26 = vector.load %arg6[%c3, %c0_14] : memref<9x256xf32, #tpu.memory_space<vmem>>, vector<1x256xf32>
    %27 = vector.broadcast %26 : vector<1x256xf32> to vector<8x256xf32>
    %28 = arith.mulf %25, %27 : vector<8x256xf32>
    %c24 = arith.constant 24 : index
    %c0_15 = arith.constant 0 : index
    %29 = vector.load %arg8[%c24, %c0_15] : memref<72x256xf32, #tpu.memory_space<vmem>>, vector<8x256xf32>
    tpu.vector_store %arg8[%c24, %c0_15], %28 {strides = array<i32>} : memref<72x256xf32, #tpu.memory_space<vmem>>, vector<8x256xf32>,
    %c32 = arith.constant 32 : index
    %c0_16 = arith.constant 0 : index
    %30 = vector.load %arg8[%c32, %c0_16] : memref<72x256xf32, #tpu.memory_space<vmem>>, vector<8x256xf32>
    tpu.vector_store %arg8[%c32, %c0_16], %9 {strides = array<i32>} : memref<72x256xf32, #tpu.memory_space<vmem>>, vector<8x256xf32>,
    %c255_i32 = arith.constant 255 : i32
    %31 = tpu.dynamic_rotate %9 by %c255_i32 dim 1 : vector<8x256xf32>, i32 -> vector<8x256xf32>
    %c5 = arith.constant 5 : index
    %c0_17 = arith.constant 0 : index
    %32 = vector.load %arg6[%c5, %c0_17] : memref<9x256xf32, #tpu.memory_space<vmem>>, vector<1x256xf32>
    %33 = vector.broadcast %32 : vector<1x256xf32> to vector<8x256xf32>
    %34 = arith.mulf %31, %33 : vector<8x256xf32>
    %c40 = arith.constant 40 : index
    %c0_18 = arith.constant 0 : index
    %35 = vector.load %arg8[%c40, %c0_18] : memref<72x256xf32, #tpu.memory_space<vmem>>, vector<8x256xf32>
    tpu.vector_store %arg8[%c40, %c0_18], %34 {strides = array<i32>} : memref<72x256xf32, #tpu.memory_space<vmem>>, vector<8x256xf32>,
    %c241_i32 = arith.constant 241 : i32
    %36 = tpu.dynamic_rotate %9 by %c241_i32 dim 1 : vector<8x256xf32>, i32 -> vector<8x256xf32>
    %c6 = arith.constant 6 : index
    %c0_19 = arith.constant 0 : index
    %37 = vector.load %arg6[%c6, %c0_19] : memref<9x256xf32, #tpu.memory_space<vmem>>, vector<1x256xf32>
    %38 = vector.broadcast %37 : vector<1x256xf32> to vector<8x256xf32>
    %39 = arith.mulf %36, %38 : vector<8x256xf32>
    %c48 = arith.constant 48 : index
    %c0_20 = arith.constant 0 : index
    %40 = vector.load %arg8[%c48, %c0_20] : memref<72x256xf32, #tpu.memory_space<vmem>>, vector<8x256xf32>
    tpu.vector_store %arg8[%c48, %c0_20], %39 {strides = array<i32>} : memref<72x256xf32, #tpu.memory_space<vmem>>, vector<8x256xf32>,
    %c240_i32 = arith.constant 240 : i32
    %41 = tpu.dynamic_rotate %9 by %c240_i32 dim 1 : vector<8x256xf32>, i32 -> vector<8x256xf32>
    %c7 = arith.constant 7 : index
    %c0_21 = arith.constant 0 : index
    %42 = vector.load %arg6[%c7, %c0_21] : memref<9x256xf32, #tpu.memory_space<vmem>>, vector<1x256xf32>
    %43 = vector.broadcast %42 : vector<1x256xf32> to vector<8x256xf32>
    %44 = arith.mulf %41, %43 : vector<8x256xf32>
    %c56 = arith.constant 56 : index
    %c0_22 = arith.constant 0 : index
    %45 = vector.load %arg8[%c56, %c0_22] : memref<72x256xf32, #tpu.memory_space<vmem>>, vector<8x256xf32>
    tpu.vector_store %arg8[%c56, %c0_22], %44 {strides = array<i32>} : memref<72x256xf32, #tpu.memory_space<vmem>>, vector<8x256xf32>,
    %c239_i32 = arith.constant 239 : i32
    %46 = tpu.dynamic_rotate %9 by %c239_i32 dim 1 : vector<8x256xf32>, i32 -> vector<8x256xf32>
    %c8_23 = arith.constant 8 : index
    %c0_24 = arith.constant 0 : index
    %47 = vector.load %arg6[%c8_23, %c0_24] : memref<9x256xf32, #tpu.memory_space<vmem>>, vector<1x256xf32>
    %48 = vector.broadcast %47 : vector<1x256xf32> to vector<8x256xf32>
    %49 = arith.mulf %46, %48 : vector<8x256xf32>
    %c64 = arith.constant 64 : index
    %c0_25 = arith.constant 0 : index
    %50 = vector.load %arg8[%c64, %c0_25] : memref<72x256xf32, #tpu.memory_space<vmem>>, vector<8x256xf32>
    tpu.vector_store %arg8[%c64, %c0_25], %49 {strides = array<i32>} : memref<72x256xf32, #tpu.memory_space<vmem>>, vector<8x256xf32>,
    %c0_26 = arith.constant 0 : index
    %c0_27 = arith.constant 0 : index
    %51 = vector.load %arg4[%c0_26, %c0_27] : memref<32x72xf32, #tpu.memory_space<vmem>>, vector<32x72xf32>
    %c0_28 = arith.constant 0 : index
    %c0_29 = arith.constant 0 : index
    %52 = vector.load %arg8[%c0_28, %c0_29] : memref<72x256xf32, #tpu.memory_space<vmem>>, vector<72x256xf32>
    %cst_30 = arith.constant dense<0.000000e+00> : vector<32x256xf32>
    %53 = tpu.matmul %51, %52, %cst_30 {dimension_numbers = #tpu.dot_dimension_numbers<[1], [0], [0], [1], [0, 0, 1, 1], [], []>} : vector<32x72xf32>, vector<72x256xf32>, vector<32x256xf32> -> vector<32x256xf32>
    %c0_31 = arith.constant 0 : index
    %c0_32 = arith.constant 0 : index
    %54 = vector.load %arg5[%c0_31, %c0_32] : memref<32x1xf32, #tpu.memory_space<vmem>>, vector<32x1xf32>
    %55 = vector.broadcast %54 : vector<32x1xf32> to vector<32x256xf32>
    %56 = arith.addf %53, %55 : vector<32x256xf32>
    %cst_33 = arith.constant 0.000000e+00 : f32
    %57 = vector.broadcast %cst_33 : f32 to vector<32x256xf32>
    %58 = arith.maximumf %56, %57 : vector<32x256xf32>
    %59 = arith.index_cast %c0_i32 : i32 to index
    %c0_34 = arith.constant 0 : index
    %c0_35 = arith.constant 0 : index
    %60 = vector.load %arg7[%59, %c0_34, %c0_35] : memref<1x32x256xf32, #tpu.memory_space<vmem>>, vector<1x32x256xf32>
    %61 = vector.shape_cast %60 : vector<1x32x256xf32> to vector<32x256xf32>
    %62 = vector.shape_cast %58 : vector<32x256xf32> to vector<1x32x256xf32>
    tpu.vector_store %arg7[%59, %c0_34, %c0_35], %62 {strides = array<i32>} : memref<1x32x256xf32, #tpu.memory_space<vmem>>, vector<1x32x256xf32>,
    %c1_i32_36 = arith.constant 1 : i32
    return
  }
  func.func @transform_0(%arg0: i32) -> (i32, i32, i32) {
    %c0_i32 = arith.constant 0 : i32
    %c0_i32_0 = arith.constant 0 : i32
    %c0_i32_1 = arith.constant 0 : i32
    return %arg0, %c0_i32, %c0_i32_0 : i32, i32, i32
  }
  func.func @transform_1(%arg0: i32) -> (i32, i32) {
    %c0_i32 = arith.constant 0 : i32
    %c0_i32_0 = arith.constant 0 : i32
    %c0_i32_1 = arith.constant 0 : i32
    return %c0_i32, %c0_i32_0 : i32, i32
  }
  func.func @transform_2(%arg0: i32) -> (i32, i32) {
    %c0_i32 = arith.constant 0 : i32
    %c0_i32_0 = arith.constant 0 : i32
    %c0_i32_1 = arith.constant 0 : i32
    return %c0_i32, %c0_i32_0 : i32, i32
  }
  func.func @transform_3(%arg0: i32) -> (i32, i32) {
    %c0_i32 = arith.constant 0 : i32
    %c0_i32_0 = arith.constant 0 : i32
    %c0_i32_1 = arith.constant 0 : i32
    return %c0_i32, %c0_i32_0 : i32, i32
  }
  func.func @transform_4(%arg0: i32) -> (i32, i32) {
    %c0_i32 = arith.constant 0 : i32
    %c0_i32_0 = arith.constant 0 : i32
    %c0_i32_1 = arith.constant 0 : i32
    return %c0_i32, %c0_i32_0 : i32, i32
  }
  func.func @transform_5(%arg0: i32) -> (i32, i32) {
    %c0_i32 = arith.constant 0 : i32
    %c0_i32_0 = arith.constant 0 : i32
    %c0_i32_1 = arith.constant 0 : i32
    return %c0_i32, %c0_i32_0 : i32, i32
  }
  func.func @transform_6(%arg0: i32) -> (i32, i32, i32) {
    %c0_i32 = arith.constant 0 : i32
    %c0_i32_0 = arith.constant 0 : i32
    %c0_i32_1 = arith.constant 0 : i32
    return %arg0, %c0_i32, %c0_i32_0 : i32, i32, i32
  }
}

</mosaic_0001>

<bundles_post_ra>
// kernel: tpu_custom_call.1
= control target key start
LH: loop header
LB: loop body
LE: loop exit
PB: predicated region body
PF: predicated region fallthrough
CT: control target
= control target key end

     0   :  { %11 = vsyncpa [#allocation4], 0  ;;  %s1366_s0 = inlined_call_operand.hbm [shape: f32[2,4,256], index: 0, kind: input, shape index: {}]   ;;  %s1367_s1 = inlined_call_operand.vmem [shape: f32[8,4], index: 1, kind: input, shape index: {}]   ;;  %s1368_s2 = inlined_call_operand.vmem [shape: f32[8,1], index: 2, kind: input, shape index: {}]   ;;  %s1369_s3 = inlined_call_operand.vmem [shape: f32[32,72], index: 3, kind: input, shape index: {}]   ;;  %s1370_s4 = inlined_call_operand.vmem [shape: f32[32,1], index: 4, kind: input, shape index: {}]   ;;  %s1371_s5 = inlined_call_operand.vmem [shape: f32[9,256], index: 5, kind: input, shape index: {}]   ;;  %s1372_s6 = inlined_call_operand.hbm [shape: f32[2,32,256], index: 6, kind: output, shape index: {}]  }
   0x1   :  { %13 = vsyncpa [#allocation4 + $0x1], 0 }
   0x2   :  { %14 = vsyncpa [#allocation5], 0 }
   0x3   :  { %16 = vsyncpa [#allocation5 + $0x1], 0  ;;  %s1068_s21 = smov 0   ;;  %s1070_s22 = smov 0  }
   0x4   :  { %s1072_s23 = smov 0   ;;  %s1074_s24 = smov 0  }
   0x5 LB: > { %s1089_s25 = sadd.s32 4294967295, %s1018_s24   ;;  %s806_s26 = sadd.s32 4294967294, %s1018_s24   ;;  %s1018_s24 = sphi %s1074_s24, %s1387_s24   ;;  %s1014_s23 = sphi %s1072_s23, %s1386_s23   ;;  %s1010_s22 = sphi %s1070_s22, %s1385_s22   ;;  %s1006_s21 = sphi %s1068_s21, %s1384_s21  }
   0x6   : > { %s1093_s27 = sadd.s32 1, %s1018_s24   ;;  %s29_s28 = sadd.s32 1, %s1014_s23 }
   0x7   : > { %s26_s29 = ssub.s32 %s1018_s24, %s1093_s27  ;;  %p36_p0 = scmp.ne.s32.totalorder %s1014_s23, %s1010_s22 }
   0x8   : > { %p27_p1 = scmp.eq.s32.totalorder %s26_s29, 0  ;;  %p37_p2 = scmp.eq.s32.totalorder %s1018_s24, 0 }
   0x9   : > { %p42_p3 = scmp.ne.s32.totalorder %s1010_s22, %s1006_s21  ;;  %p43_p4 = scmp.eq.s32.totalorder %s1089_s25, 0 }
   0xa   : > { %s1105_s30 = scalar_select %p27_p1, %s1014_s23, %s29_s28  }
   0xb   : > { %p1107_p5 = por %p37_p2, %p36_p0  ;;  %p1111_p6 = por %p43_p4, %p42_p3 }
   0xc   : > { %p171_p7 = scmp.eq.s32.totalorder %s1089_s25, 1  ;;  %p177_p8 = scmp.eq.s32.totalorder %s806_s26, 1 }
   0xd   : > { %p874_p10 = scmp.lt.s32.totalorder %s1018_s24, 2  ;;  %s212_s11 = sand.u32 1, %s1014_s23  }
   0xe   : > { %p1118_p11 = por %p171_p7, %p36_p0  ;;  %p1122_p12 = por %p177_p8, %p42_p3 }
   0xf   : > { %s834_s12 = sshll.u32 %s1018_s24, 7  ;;  %s809_s13 = sshll.u32 %s212_s11, 3 }
  0x10   : > { %s1376_s9 = scalar_select %p1118_p11, 1, 0 }
  0x11   : > { %s1377_s10 = scalar_select %p1122_p12, 1, 0 }
  0x12   : > { %s1131_s16 = scalar_lea.hbm %s1366_s0, %s834_s12  ;;  %s216_s17 = scalar_lea.vmem [#allocation3], %s809_s13 }
  0x13   : > { %s224_s18 = sshll.u32 %s216_s17, 4  ;;  %p1135_p13 = pnand %p874_p10, %p1107_p5  ;;  %s1139_s18 = int_to_ptr.vmem [resolvable:$true] %s224_s18 }
  0x14   : > { %s213_s20 = scalar_lea.sflag [#allocation4], %s212_s11  ;;  %s922_s26 = scalar_lea.hbm %s1131_s16, 128 }
  0x15   : > { %p923_p2 = scmp.ne.s32.totalorder %s1131_s16, %s922_s26  ;;  %p924_p3 = pneg %p1135_p13 }
  0x16   : > { %s927_s7 = scalar_lea.hbm %s1366_s0, 256  ;;  %p928_p5 = scmp.lt.u32.totalorder %s1131_s16, %s1366_s0 }
  0x17   : > { %p925_p4 = pnand %p924_p3, %p923_p2  ;;  %p929_p8 = scmp.lt.u32.totalorder %s927_s7, %s922_s26 }
  0x18   : > { %p931_p9 = scmp.lt.u32.totalorder %s922_s26, %s1131_s16 }
  0x19   : > { %p926_p7 = pneg %p925_p4  ;;  %p930_p10 = por %p929_p8, %p928_p5 }
  0x1b   : > { %p932_p0 = por %p931_p9, %p930_p10 }
  0x1d   : > { %p933_p1 = pnand %p932_p0, %p926_p7 }
  0x1f   : > { %936 = shalt.err (!%p933_p1)
}
  0x20   : > { %s937_s11 = scalar_lea.vmem %s1139_s18, 128  ;;  %s1020_s14 = smov [#allocation3]  }
  0x21   : > { %p938_p2 = scmp.ne.s32.totalorder %s1139_s18, %s937_s11  ;;  %s942_s15 = sshll.u32 %s1020_s14, 4  ;;  %s943_s15 = int_to_ptr.vmem [resolvable:$false] %s942_s15 }
  0x22   : > { %s944_s17 = scalar_lea.vmem %s943_s15, 256  ;;  %p945_p11 = scmp.lt.s32.totalorder %s1139_s18, %s943_s15 }
  0x23   : > { %p940_p4 = pnand %p938_p2, %p924_p3  ;;  %p946_p5 = scmp.lt.s32.totalorder %s944_s17, %s937_s11 }
  0x25   : > { %p941_p12 = pneg %p940_p4  ;;  %p947_p8 = por %p946_p5, %p945_p11 }
  0x27   : > { %p948_p9 = pnand %p947_p8, %p941_p12 }
  0x29   : > { %951 = shalt.err (!%p948_p9)
}
  0x2a   : > { %869 = dma.hbm_to_vmem [thread:$0]  (!%p1135_p13), %s1131_s16, 128, %s1139_s18, %s213_s20  }
  0x2b   : > { %p1379_p0 = scmp.lt.s32.totalorder %s1018_s24, 3  ;;  %p1380_p1 = scmp.ge.s32.totalorder %s1018_s24, 1 }
  0x2d   : > { %p230_p3 = pnand %p1380_p1, %p1379_p0 }
  0x2e   : > { %s1173_s26 = sand.u32 (!%p230_p3), 1, %s1010_s22  }
  0x2f   : > { %233 = sbr.rel (%p230_p3) target bundleno = 666 (0x29a), region = 44  ;;  %s813_s28 = sshll.u32 (!%p230_p3), %s1173_s26, 3 }
  0x30   : > { %s236_s29 = scalar_lea.sflag (!%p230_p3), [#allocation4], %s1173_s26  ;;  %s239_s7 = scalar_lea.vmem (!%p230_p3), [#allocation3], %s813_s28 }
  0x36   : > { %997 = dma.done.wait (%p1111_p6), %s236_s29, 128  }
  0x37   : > { %999 = vsyncadd (%p1111_p6), %s236_s29, 4294967168  ;;  %v1021_v0 = vmov 0.0   ;;  %v1022_v1 = vmov 0   ;;  %v268_v2 = vld [vmem:[%s239_s7] sm:$0xff]  ;;  %vm282_vm0 = vcmask 1043456   ;;  %vm278_vm1 = vcmask 31744  }
  0x38   : > { %351 = vmatprep.mubr.f32.mxu0 %v1021_v0  ;;  %919 = vset.pattern.permute.xlu0 %v1022_v1  ;;  %v270_v3 = vld [vmem:[%s1368_s2] sm:$0xff]  ;;  %v277_v4 = vcombine.high %v268_v2, %v268_v2  ;;  %s1023_s8 = smov 16   ;;  %s1024_s12 = smov 17   ;;  %v578_v13 = vld [vmem:[%s1370_s4 + $0x8] sm:$0xff]  ;;  %v580_v14 = vld [vmem:[%s1370_s4 + $0x18] sm:$0xff]  ;;  %v364_v17 = vlaneseq  ;;  %vm601_vm10 = vcmask 588800  }
  0x39   : > { %684 = vmatprep.mubr.f32.mxu1 %v1021_v0  ;;  %920 = vset.pattern.permute.xlu1 %v1022_v1  ;;  %v269_v5 = vld [vmem:[%s1367_s1] sm:$0xff]  ;;  %s1025_s13 = smov 15   ;;  %s1026_s11 = smov 1   ;;  %v579_v16 = vld [vmem:[%s1370_s4 + $0x10] sm:$0xff] }
  0x3a   : > { %273 = vperm.xlu0 %919, %v270_v3   ;;  %815 = vmatprep.subr.msk.mxu0 %vm282_vm0, %v277_v4  ;;  %s1027_s14 = smov 127   ;;  %s1028_s15 = smov 113   ;;  %v577_v15 = vld [vmem:[%s1370_s4] sm:$0xff]  ;;  %v372_v20 = vshrl.u32 %v364_v17, 7  ;;  %v1224_v21 = vand.u32 127, %v364_v17 }
  0x3b   : > { %816 = vmatpush1.msk.msra.mxu0 %vm282_vm0, %v268_v2  ;;  %s1029_s17 = smov 112   ;;  %s1030_s28 = smov 111   ;;  %v818_v26 = vld [vmem:[%s1371_s5 + $0x1] ss:$8 sm:$0x3] }
  0x3c   : > { %817 = vmatmul.mubr.msk.f32.vlgmr.msra.gmra.mrb[0].mxu0 %vm278_vm1, %v269_v5  ;;  %v1226_v23 = vsub.s32 0, %v372_v20  ;;  %v1228_v24 = vsub.s32 1, %v372_v20  ;;  %vm389_vm2 = vcmp.lt.s32.totalorder %v1224_v21, 16  ;;  %v369_v27 = vld [vmem:[%s1371_s5] ss:$8 sm:$0x3] }
  0x3d   : > { %678 = vmatprep.mubr.f32.mxu0 %v1021_v0  ;;  %v820_v28 = vld [vmem:[%s1371_s5 + $0x3] ss:$8 sm:$0x3]  ;;  %v819_v32 = vld [vmem:[%s1371_s5 + $0x2] ss:$8 sm:$0x3] }
  0x3e   : > { %v398_v29 = vrot.slane %v818_v26, %v1226_v23  ;;  %v402_v30 = vrot.slane %v818_v26, %v1228_v24  ;;  %vm413_vm3 = vcmp.lt.s32.totalorder %v1224_v21, 15  ;;  %vm366_vm4 = vcmp.lt.s32.totalorder %v1224_v21, 17  ;;  %v821_v36 = vld [vmem:[%s1371_s5 + $0x5] ss:$8 sm:$0x3]  ;;  %s720_s29 = scalar_lea.sflag [#allocation5], %s1173_s26 }
  0x3f   : > { %v374_v37 = vrot.slane %v369_v27, %v1226_v23  ;;  %v378_v38 = vrot.slane %v369_v27, %v1228_v24  ;;  %vm437_vm5 = vcmp.lt.s32.totalorder %v1224_v21, 1  ;;  %v450_v39 = vrot.slane %v820_v28, %v1228_v24  ;;  %v822_v5 = vld [vmem:[%s1371_s5 + $0x6] ss:$8 sm:$0x3]  ;;  %p1381_p11 = scmp.ne.s32.totalorder %s1376_s9, 0 }
  0x40   : > { %v426_v40 = vrot.slane %v819_v32, %v1228_v24  ;;  %v446_v41 = vrot.slane %v820_v28, %v1226_v23  ;;  %vm463_vm6 = vcmp.lt.s32.totalorder %v1224_v21, 127  ;;  %v476_v46 = vrot.slane %v821_v36, %v1228_v24 }
  0x41   : > { %v422_v55 = vrot.slane %v819_v32, %v1226_v23  ;;  %v472_v63 = vrot.slane %v821_v36, %v1226_v23  ;;  %vm487_vm7 = vcmp.lt.s32.totalorder %v1224_v21, 113  ;;  %vm511_vm8 = vcmp.lt.s32.totalorder %v1224_v21, 112 }
  0x42   : > { %vm535_vm9 = vcmp.lt.s32.totalorder %v1224_v21, 111  ;;  %v557_v21 = vld [vmem:[%s1369_s3 + $0x10] sm:$0xff] }
  0xb9   : > { %v274_v6 = vpop.permute.xlu0 %273 }
 0x10f   : > { %v353_v7 = vpop.f32.mrb[0].mxu0 }
 0x110   : > { %v354_v8 = vadd.f32 %v353_v7, %v274_v6  ;;  %v355_v9 = vpop.f32.mrb[1].mxu0  ;;  %v823_v7 = vld [vmem:[%s1371_s5 + $0x7] ss:$8 sm:$0x3] }
 0x111   : > { %v356_v11 = vadd.f32 %v355_v9, %v274_v6  ;;  %v520_v17 = vrot.slane %v823_v7, %v1226_v23 }
 0x112   : > { %v1190_v10 = vmax.f32 %v354_v8, 0.0 }
 0x113   : > { %v1195_v12 = vmax.f32 %v356_v11, 0.0 }
 0x114   : > { %385 = vrot.lane.b32.xlu1 %v1190_v10, %s1023_s8  ;;  %360 = vrot.lane.b32.xlu0 %v1190_v10, %s1024_s12 }
 0x118   : > { %409 = vrot.lane.b32.xlu1 %v1190_v10, %s1025_s13  ;;  %387 = vrot.lane.b32.xlu0 %v1195_v12, %s1023_s8 }
 0x11c   : > { %433 = vrot.lane.b32.xlu1 %v1190_v10, %s1026_s11  ;;  %411 = vrot.lane.b32.xlu0 %v1195_v12, %s1025_s13 }
 0x120   : > { %362 = vrot.lane.b32.xlu1 %v1195_v12, %s1024_s12  ;;  %435 = vrot.lane.b32.xlu0 %v1195_v12, %s1026_s11  ;;  %s814_s12 = sshll.u32 %s1173_s26, 6 }
 0x121   : > { %s267_s13 = scalar_lea.vmem [#allocation6], %s814_s12 }
 0x122   : > { %s733_s11 = sshll.u32 %s267_s13, 4  ;;  %s1316_s11 = int_to_ptr.vmem [resolvable:$true] %s733_s11 }
 0x123   : > { %s952_s7 = scalar_lea.vmem %s1316_s11, 1024 }
 0x124   : > { %459 = vrot.lane.b32.xlu1 %v1190_v10, %s1027_s14  ;;  %461 = vrot.lane.b32.xlu0 %v1195_v12, %s1027_s14  ;;  %s835_s14 = sshll.u32 %s1089_s25, 10  ;;  %p953_p6 = scmp.ne.s32.totalorder %s1316_s11, %s952_s7 }
 0x125   : > { %s1031_s25 = smov [#allocation6]  }
 0x126   : > { %p954_p12 = pnand %p953_p6, %p1381_p11  ;;  %s956_s16 = sshll.u32 %s1031_s25, 4  ;;  %s957_s16 = int_to_ptr.vmem [resolvable:$false] %s956_s16 }
 0x127   : > { %s958_s18 = scalar_lea.vmem %s957_s16, 2048  ;;  %p959_p7 = scmp.lt.s32.totalorder %s1316_s11, %s957_s16 }
 0x128   : > { %483 = vrot.lane.b32.xlu1 %v1190_v10, %s1028_s15  ;;  %485 = vrot.lane.b32.xlu0 %v1195_v12, %s1028_s15  ;;  %p955_p13 = pneg %p954_p12  ;;  %p960_p10 = scmp.lt.s32.totalorder %s958_s18, %s952_s7 }
 0x12a   : > { %p961_p2 = por %p960_p10, %p959_p7 }
 0x12c   : > { %507 = vrot.lane.b32.xlu1 %v1190_v10, %s1029_s17  ;;  %509 = vrot.lane.b32.xlu0 %v1195_v12, %s1029_s17  ;;  %p962_p4 = pnand %p961_p2, %p955_p13 }
 0x130   : > { %531 = vrot.lane.b32.xlu1 %v1190_v10, %s1030_s28  ;;  %533 = vrot.lane.b32.xlu0 %v1195_v12, %s1030_s28  ;;  %s1321_s28 = scalar_lea.hbm %s1372_s6, %s835_s14 }
 0x134   : > { %588 = vperm.xlu0 %919, %v578_v13   ;;  %583 = vperm.xlu1 %920, %v577_v15   ;;  %v500_v15 = vrot.slane %v822_v5, %v1228_v24 }
 0x138   : > { %598 = vperm.xlu0 %919, %v580_v14   ;;  %593 = vperm.xlu1 %920, %v579_v16   ;;  %v496_v14 = vrot.slane %v822_v5, %v1226_v23 }
 0x186   : > { %v386_v18 = vpop.permute.xlu1 %385  ;;  %v361_v19 = vpop.permute.xlu0 %360 }
 0x18a   : > { %v410_v22 = vpop.permute.xlu1 %409  ;;  %v388_v25 = vpop.permute.xlu0 %387 }
 0x18b   : > { %v390_v34 = vsel %vm389_vm2, %v386_v18, %v388_v25  ;;  %v391_v35 = vsel %vm389_vm2, %v388_v25, %v386_v18  ;;  %v524_v18 = vrot.slane %v823_v7, %v1228_v24 }
 0x18c   : > { %v405_v42 = vmul.f32 %v398_v29, %v391_v35  ;;  %v406_v43 = vmul.f32 %v402_v30, %v390_v34 }
 0x18e   : > { %v434_v31 = vpop.permute.xlu1 %433  ;;  %v412_v33 = vpop.permute.xlu0 %411 }
 0x18f   : > { %v414_v47 = vsel %vm413_vm3, %v410_v22, %v412_v33  ;;  %v415_v56 = vsel %vm413_vm3, %v412_v33, %v410_v22 }
 0x190   : > { %v430_v57 = vmul.f32 %v426_v40, %v414_v47  ;;  %v429_v6 = vmul.f32 %v422_v55, %v415_v56 }
 0x192   : > { %v363_v44 = vpop.permute.xlu1 %362  ;;  %v436_v45 = vpop.permute.xlu0 %435 }
 0x193   : > { %v367_v48 = vsel %vm366_vm4, %v361_v19, %v363_v44  ;;  %v368_v49 = vsel %vm366_vm4, %v363_v44, %v361_v19  ;;  %v438_v50 = vsel %vm437_vm5, %v434_v31, %v436_v45  ;;  %v439_v53 = vsel %vm437_vm5, %v436_v45, %v434_v31  ;;  %v824_v19 = vld [vmem:[%s1371_s5 + $0x10] ss:$8 sm:$0x3] }
 0x194   : > { %v381_v51 = vmul.f32 %v374_v37, %v368_v49  ;;  %v382_v52 = vmul.f32 %v378_v38, %v367_v48  ;;  %v454_v54 = vmul.f32 %v450_v39, %v438_v50  ;;  %v453_v62 = vmul.f32 %v446_v41, %v439_v53  ;;  %v556_v41 = vld [vmem:[%s1369_s3 + $0x8] sm:$0xff] }
 0x195   : > { %v548_v29 = vrot.slane %v824_v19, %v1228_v24  ;;  %v544_v38 = vrot.slane %v824_v19, %v1226_v23  ;;  %v555_v23 = vld [vmem:[%s1369_s3] sm:$0xff] }
 0x196   : > { %v838_v58 = vpack.c.bf16 %v405_v42, %v381_v51  ;;  %v460_v59 = vpop.permute.xlu1 %459  ;;  %v462_v60 = vpop.permute.xlu0 %461  ;;  %v836_v61 = vpack.c.bf16 %v406_v43, %v382_v52  ;;  %v840_v4 = vpack.c.bf16 %v454_v54, %v430_v57  ;;  %v842_v11 = vpack.c.bf16 %v453_v62, %v429_v6  ;;  %v558_v42 = vld [vmem:[%s1369_s3 + $0x18] sm:$0xff] }
 0x197   : > { %v465_v1 = vsel %vm463_vm6, %v462_v60, %v460_v59  ;;  %v464_v2 = vsel %vm463_vm6, %v460_v59, %v462_v60 }
 0x198   : > { %v480_v3 = vmul.f32 %v476_v46, %v465_v1  ;;  %837 = vmatprep.subr.bf16.mxu0 %v836_v61  ;;  %852 = vmatprep.subr.bf16.mxu1 %v836_v61  ;;  %v479_v13 = vmul.f32 %v472_v63, %v464_v2 }
 0x199   : > { %839 = vmatpush1.bf16.msra.mxu0 %v838_v58  ;;  %857 = vmatpush1.bf16.msra.mxu1 %v838_v58 }
 0x19a   : > { %v484_v8 = vpop.permute.xlu1 %483  ;;  %841 = vmatprep.subr.bf16.mxu0 %v840_v4  ;;  %853 = vmatprep.subr.bf16.mxu1 %v840_v4  ;;  %v486_v9 = vpop.permute.xlu0 %485  ;;  %v844_v16 = vpack.c.bf16 %v480_v3, %v1195_v12  ;;  %v846_v12 = vpack.c.bf16 %v479_v13, %v1190_v10 }
 0x19b   : > { %v488_v20 = vsel %vm487_vm7, %v484_v8, %v486_v9  ;;  %v489_v22 = vsel %vm487_vm7, %v486_v9, %v484_v8 }
 0x19c   : > { %v503_v30 = vmul.f32 %v496_v14, %v488_v20  ;;  %v504_v31 = vmul.f32 %v500_v15, %v489_v22 }
 0x19d   : > { %843 = vmatpush1.bf16.msra.mxu0 %v842_v11  ;;  %858 = vmatpush1.bf16.msra.mxu1 %v842_v11 }
 0x19e   : > { %v508_v25 = vpop.permute.xlu1 %507  ;;  %845 = vmatprep.subr.bf16.mxu0 %v844_v16  ;;  %854 = vmatprep.subr.bf16.mxu1 %v844_v16  ;;  %v510_v26 = vpop.permute.xlu0 %509 }
 0x19f   : > { %v512_v27 = vsel %vm511_vm8, %v508_v25, %v510_v26  ;;  %v513_v28 = vsel %vm511_vm8, %v510_v26, %v508_v25 }
 0x1a0   : > { %v527_v32 = vmul.f32 %v520_v17, %v512_v27  ;;  %v528_v33 = vmul.f32 %v524_v18, %v513_v28 }
 0x1a1   : > { %847 = vmatpush1.bf16.msra.mxu0 %v846_v12  ;;  %859 = vmatpush1.bf16.msra.mxu1 %v846_v12 }
 0x1a2   : > { %v850_v34 = vpack.c.bf16 %v527_v32, %v503_v30  ;;  %v532_v35 = vpop.permute.xlu1 %531  ;;  %v534_v36 = vpop.permute.xlu0 %533  ;;  %v848_v37 = vpack.c.bf16 %v528_v33, %v504_v31 }
 0x1a3   : > { %v537_v39 = vsel %vm535_vm9, %v534_v36, %v532_v35  ;;  %v536_v10 = vsel %vm535_vm9, %v532_v35, %v534_v36 }
 0x1a4   : > { %v552_v40 = vmul.f32 %v548_v29, %v537_v39  ;;  %849 = vmatprep.subr.bf16.mxu0 %v848_v37  ;;  %855 = vmatprep.subr.bf16.mxu1 %v848_v37  ;;  %v551_v24 = vmul.f32 %v544_v38, %v536_v10 }
 0x1a5   : > { %851 = vmatpush1.bf16.msra.mxu0 %v850_v34  ;;  %860 = vmatpush1.bf16.msra.mxu1 %v850_v34 }
 0x1a6   : > { %630 = vmatprep.subr.mxu0 %v552_v40  ;;  %856 = vmatprep.subr.mxu1 %v552_v40 }
 0x1a9   : > { %631 = vmatpush1.msra.mxu0 %v551_v24  ;;  %861 = vmatpush1.msra.mxu1 %v551_v24 }
 0x1aa   : > { %826 = vmatmul.mubr.msk.f32.vlgmr.msra.gmra.mrb[0].mxu1 %vm601_vm10, %v556_v41  ;;  %825 = vmatmul.mubr.msk.f32.vlgmr.msra.gmra.mrb[2].mxu0 %vm601_vm10, %v555_v23 }
 0x1ab   : > { %690 = vmatprep.mubr.f32.mxu1 %v1021_v0 }
 0x1ae   : > { %827 = vmatmul.mubr.msk.f32.gmra.mrb[2].mxu1 %vm601_vm10, %v557_v21 }
 0x1af   : > { %696 = vmatprep.mubr.f32.mxu1 %v1021_v0 }
 0x1b2   : > { %828 = vmatmul.mubr.msk.f32.gmra.mrb[4].mxu1 %vm601_vm10, %v558_v42 }
 0x1b3   : > { %v584_v43 = vpop.permute.xlu1 %583  ;;  %v589_v44 = vpop.permute.xlu0 %588 }
 0x1b7   : > { %v594_v52 = vpop.permute.xlu1 %593  ;;  %v599_v62 = vpop.permute.xlu0 %598 }
 0x27d   : > { %v686_v45 = vpop.f32.mrb[0].mxu1  ;;  %v680_v46 = vpop.f32.mrb[2].mxu0 }
 0x27e   : > { %v687_v47 = vadd.f32 %v686_v45, %v589_v44  ;;  %v688_v48 = vpop.f32.mrb[1].mxu1  ;;  %v681_v49 = vadd.f32 %v680_v46, %v584_v43  ;;  %v682_v50 = vpop.f32.mrb[3].mxu0 }
 0x27f   : > { %v689_v51 = vadd.f32 %v688_v48, %v589_v44  ;;  %v683_v53 = vadd.f32 %v682_v50, %v584_v43 }
 0x280   : > { %v705_v54 = vmax.f32 %v687_v47, 0.0  ;;  %v703_v55 = vmax.f32 %v681_v49, 0.0 }
 0x281   : > { %v706_v0 = vmax.f32 %v689_v51, 0.0  ;;  %v692_v56 = vpop.f32.mrb[2].mxu1  ;;  %v704_v57 = vmax.f32 %v683_v53, 0.0 }
 0x282   : > { %713 = vst [vmem:[%s267_s13 + $0x10] sm:$0xff] %v705_v54  ;;  %711 = vst [vmem:[%s267_s13] sm:$0xff] %v703_v55  ;;  %v693_v58 = vadd.f32 %v692_v56, %v594_v52  ;;  %v694_v59 = vpop.f32.mrb[3].mxu1 }
 0x283   : > { %714 = vst [vmem:[%s267_s13 + $0x18] sm:$0xff] %v706_v0  ;;  %712 = vst [vmem:[%s267_s13 + $0x8] sm:$0xff] %v704_v57  ;;  %v695_v60 = vadd.f32 %v694_v59, %v594_v52 }
 0x284   : > { %v707_v61 = vmax.f32 %v693_v58, 0.0 }
 0x285   : > { %v708_v63 = vmax.f32 %v695_v60, 0.0  ;;  %v698_v1 = vpop.f32.mrb[4].mxu1 }
 0x286   : > { %715 = vst [vmem:[%s267_s13 + $0x20] sm:$0xff] %v707_v61  ;;  %v699_v2 = vadd.f32 %v698_v1, %v599_v62  ;;  %v700_v3 = vpop.f32.mrb[5].mxu1 }
 0x287   : > { %716 = vst [vmem:[%s267_s13 + $0x28] sm:$0xff] %v708_v63  ;;  %v701_v4 = vadd.f32 %v700_v3, %v599_v62 }
 0x288   : > { %v709_v5 = vmax.f32 %v699_v2, 0.0 }
 0x289   : > { %v710_v6 = vmax.f32 %v701_v4, 0.0 }
 0x28a   : > { %717 = vst [vmem:[%s267_s13 + $0x30] sm:$0xff] %v709_v5 }
 0x28b   : > { %718 = vst [vmem:[%s267_s13 + $0x38] sm:$0xff] %v710_v6 }
 0x28c   : > { %965 = shalt.err (!%p962_p4)
}
 0x28d   : > { %s966_s19 = scalar_lea.hbm %s1321_s28, 1024  ;;  %s970_s13 = scalar_lea.hbm %s1372_s6, 2048 }
 0x28e   : > { %p967_p5 = scmp.ne.s32.totalorder %s1321_s28, %s966_s19  ;;  %p971_p0 = scmp.lt.u32.totalorder %s1321_s28, %s1372_s6 }
 0x28f   : > { %p972_p1 = scmp.lt.u32.totalorder %s970_s13, %s966_s19  ;;  %p974_p6 = scmp.lt.u32.totalorder %s966_s19, %s1321_s28 }
 0x290   : > { %p968_p8 = pnand %p967_p5, %p1381_p11 }
 0x291   : > { %p973_p3 = por %p972_p1, %p971_p0 }
 0x292   : > { %p969_p9 = pneg %p968_p8 }
 0x293   : > { %p975_p12 = por %p974_p6, %p973_p3 }
 0x295   : > { %p976_p13 = pnand %p975_p12, %p969_p9 }
 0x297   : > { %979 = shalt.err (!%p976_p13)
}
 0x298   : > { %s1032_s17 = smov 256  }
 0x299   : > { %864 = dma.vmem_to_hbm [thread:$0]  (%p1381_p11), %s1316_s11, 1024, %s1321_s28, %s720_s29, %s1032_s17, %s1032_s17, %s1023_s8  }
 0x29a PF: > { %s748_s7 = sand.u32 1, %s1006_s21   ;;  %p1382_p7 = scmp.ne.s32.totalorder %s1377_s10, 0 }
 0x29b   : > { %p1383_p10 = scmp.ge.s32.totalorder %s1018_s24, 2  ;;  %s749_s25 = scalar_lea.sflag [#allocation5], %s748_s7 }
 0x29d   : > { %p871_p2 = pnand %p1383_p10, %p1382_p7 }
 0x29f   : > { %1001 = dma.done.wait (!%p871_p2), %s749_s25, 1024  }
 0x2a0   : > { %1003 = vsyncadd (!%p871_p2), %s749_s25, 4294966272  ;;  %p19_p4 = scmp.ge.s32.totalorder %s1093_s27, 4   ;;  %s1384_s21 = smov %s1010_s22 }
 0x2a1   : > { %s1385_s22 = smov %s1014_s23  ;;  %s1386_s23 = smov %s1105_s30 }
 0x2a2   : > { %s1387_s24 = smov %s1093_s27  ;;  %21 = sbr.rel (!%p19_p4) target bundleno = 5 (0x5), region = 96 }
 0x2a9   :  { %754 = vsyncpa [#allocation4], 1 }
 0x2aa   :  { %756 = vsyncpa [#allocation4 + $0x1], 1 }
 0x2ab   :  { %757 = vsyncpa [#allocation5], 1 }
 0x2ac   :  { %759 = vsyncpa [#allocation5 + $0x1], 1 }

</bundles_post_ra>
